<compile_context>
chip_gen: v5e
topology: v5e:2x2
jax: 0.10.0
libtpu: 0.0.40
codegen_flags: <defaults>
</compile_context>

<pallas_src>
import functools

import jax
import jax.numpy as jnp
from jax.experimental import pallas as pl
from jax.experimental.pallas import tpu as pltpu

_MASK_VAL = -1e30  # finite "-inf" pad for vocab lanes (exp() underflows to 0)


def _round_up(x, m):
    return (x + m - 1) // m * m


def _pick_tile_bt(BT):
    # Prefer a divisor of BT (no padded rows, no wrapper slice) with at least
    # two tiles (v7x megacore sharding of the parallel grid axis), capped at 64
    # rows to bound vreg pressure in the LSE tile.
    for cand in (64, 32, 16, 8):
        if BT % cand == 0 and BT // cand >= 2:
            return cand
    return max(8, min(64, _round_up(BT, 8)))


def prepare_embedding(emb):
    """Pad/cast the (V, V) table once (hoisted out of the per-step forward).

    Rows and columns are padded to a multiple of 128 with _MASK_VAL:
      * padded COLUMNS make the in-kernel log-sum-exp exact without a mask;
      * padded ROWS are never gathered (token ids are < V).
    """
    V = emb.shape[0]
    Vp = _round_up(V, 128)
    return jnp.pad(emb.astype(jnp.float32), ((0, Vp - V), (0, Vp - V)),
                   constant_values=_MASK_VAL)


def _gather_rows_from_vmem(x_sm, emb_ref, buf, base, tile_bt):
    """In-VMEM gather: buf[r, :] = emb[x[base + r], :] for r in [0, tile_bt).

    `emb_ref` is the VMEM-resident padded table; token ids come from SMEM
    (scalar prefetch) and are used as dynamic sublane offsets.  No HBM DMA,
    no per-descriptor latency, repeated token ids hit VMEM.
    """
    for r in range(tile_bt):                      # static python unroll
        tok = x_sm[base + r]                      # scalar read from SMEM
        buf[pl.ds(r, 1), :] = emb_ref[pl.ds(tok, 1), :]


def _nll_rows(rows, y_col):
    """Per-row cross-entropy (lse - picked) on a (tile_bt, Vp) tile.

    Padded vocab lanes already hold _MASK_VAL (from the padded table), so the
    LSE needs no mask; only the `col == y` compare remains for `picked`.
    """
    m = jnp.max(rows, axis=-1, keepdims=True)
    lse = m + jnp.log(jnp.sum(jnp.exp(rows - m), axis=-1, keepdims=True))
    col = jax.lax.broadcasted_iota(jnp.int32, rows.shape, 1)
    picked = jnp.sum(jnp.where(col == y_col, rows, 0.0), axis=-1, keepdims=True)
    return lse - picked


def _logits_kernel(x_sm, emb_ref, logits_ref, buf, *, V, tile_bt):
    t = pl.program_id(0)
    _gather_rows_from_vmem(x_sm, emb_ref, buf, t * tile_bt, tile_bt)
    rows = buf[...]
    logits_ref[...] = rows[:, :V]


def _logits_loss_kernel(x_sm, y_ref, emb_ref, logits_ref, nll_ref, buf,
                        *, V, tile_bt):
    t = pl.program_id(0)
    _gather_rows_from_vmem(x_sm, emb_ref, buf, t * tile_bt, tile_bt)
    rows = buf[...]
    logits_ref[...] = rows[:, :V]
    nll_ref[...] = _nll_rows(rows, y_ref[...])


def _loss_only_kernel(x_sm, y_ref, emb_ref, nll_ref, buf, *, tile_bt):
    t = pl.program_id(0)
    _gather_rows_from_vmem(x_sm, emb_ref, buf, t * tile_bt, tile_bt)
    nll_ref[...] = _nll_rows(buf[...], y_ref[...])


def bigram_forward(x, emb, y=None, *, tile_bt=None, want_logits=True,
                   emb_prepared=None):
    """Pallas equivalent of BigramLanguageModel.forward.

    x: (B, T) int tokens, emb: (V, V) float32 embedding table, y: optional (B, T).
    Pass `emb_prepared=prepare_embedding(emb)` to reuse the padded table across
    steps.  Returns (logits (B, T, V) float32 or None, loss scalar or None).
    """
    B, T = x.shape
    V = int(emb.shape[0])
    BT = B * T
    Vp = _round_up(V, 128)

    emb_p = emb_prepared if emb_prepared is not None else prepare_embedding(emb)

    if tile_bt is None:
        tile_bt = _pick_tile_bt(BT)
    tile_bt = max(8, _round_up(tile_bt, 8))
    BTp = _round_up(BT, tile_bt)
    n_tiles = BTp // tile_bt

    # Flat token ids -> SMEM via scalar prefetch; pad with 0 (a valid row id;
    # padded rows are excluded from the mean / sliced off below).
    x_flat = jnp.pad(x.reshape(BT).astype(jnp.int32), (0, BTp - BT))

    grid = (n_tiles,)
    cparams = pltpu.CompilerParams(dimension_semantics=("parallel",))

    # Table: full (Vp, Vp) block, constant index_map -> resident in VMEM for
    # the whole grid (fetched once, never re-DMA'd).
    emb_spec = pl.BlockSpec((Vp, Vp), lambda t, x_sm: (0, 0))
    # Logits: last dim equal to the full array dim (V) is legal -> no padded
    # vocab lanes in HBM and no post-kernel slice copy.
    logits_spec = pl.BlockSpec((tile_bt, V), lambda t, x_sm: (t, 0))
    col_spec = pl.BlockSpec((tile_bt, 1), lambda t, x_sm: (t, 0))
    scratch = [pltpu.VMEM((tile_bt, Vp), jnp.float32)]

    if y is None:
        kernel = functools.partial(_logits_kernel, V=V, tile_bt=tile_bt)
        logits = pl.pallas_call(
            kernel,
            out_shape=jax.ShapeDtypeStruct((BTp, V), jnp.float32),
            grid_spec=pltpu.PrefetchScalarGridSpec(
                num_scalar_prefetch=1, grid=grid,
                in_specs=[emb_spec],
                out_specs=logits_spec,
                scratch_shapes=scratch),
            compiler_params=cparams,
        )(x_flat, emb_p)
        if BTp != BT:
            logits = logits[:BT]
        return logits.reshape(B, T, V), None

    y_col = jnp.pad(y.reshape(BT, 1).astype(jnp.int32), ((0, BTp - BT), (0, 0)))

    if want_logits:
        kernel = functools.partial(_logits_loss_kernel, V=V, tile_bt=tile_bt)
        logits, nll = pl.pallas_call(
            kernel,
            out_shape=(jax.ShapeDtypeStruct((BTp, V), jnp.float32),
                       jax.ShapeDtypeStruct((BTp, 1), jnp.float32)),
            grid_spec=pltpu.PrefetchScalarGridSpec(
                num_scalar_prefetch=1, grid=grid,
                in_specs=[col_spec, emb_spec],
                out_specs=(logits_spec, col_spec),
                scratch_shapes=scratch),
            compiler_params=cparams,
        )(x_flat, y_col, emb_p)
        loss = jnp.sum(nll[:BT, 0]) / BT          # mean over the TRUE B*T rows
        if BTp != BT:
            logits = logits[:BT]
        return logits.reshape(B, T, V), loss

    # Loss-only variant: skips the (BT, V) logits HBM writeback entirely.
    kernel = functools.partial(_loss_only_kernel, tile_bt=tile_bt)
    nll = pl.pallas_call(
        kernel,
        out_shape=jax.ShapeDtypeStruct((BTp, 1), jnp.float32),
        grid_spec=pltpu.PrefetchScalarGridSpec(
            num_scalar_prefetch=1, grid=grid,
            in_specs=[col_spec, emb_spec],
            out_specs=col_spec,
            scratch_shapes=scratch),
        compiler_params=cparams,
    )(x_flat, y_col, emb_p)
    return None, jnp.sum(nll[:BT, 0]) / BT


if __name__ == "__main__":
    # Small, deterministic setup: vocab=65 (tiny-shakespeare-like), B=2, T=8.
    vocab_size = 65
    B, T = 2, 8

    key = jax.random.PRNGKey(0)
    k_emb, k_x, k_y = jax.random.split(key, 3)

    # nn.Embedding default init: N(0, 1).
    emb = jax.random.normal(k_emb, (vocab_size, vocab_size), dtype=jnp.float32)
    x = jax.random.randint(k_x, (B, T), 0, vocab_size, dtype=jnp.int32)
    y = jax.random.randint(k_y, (B, T), 0, vocab_size, dtype=jnp.int32)

    # Hoisted table preparation (pad + cast once, reused across forward calls).
    emb_p = prepare_embedding(emb)

    # Main path: logits + loss; tile_bt=8 -> 2-tile parallel grid.
    logits, loss = bigram_forward(x, emb, y, tile_bt=8, emb_prepared=emb_p)
    logits = jax.block_until_ready(logits)
    loss = jax.block_until_ready(loss)

    # Pure-JAX reference.
    ref_logits = emb[x]                                             # (B, T, V)
    ref_flat = ref_logits.reshape(B * T, vocab_size)
    ref_lse = jax.nn.logsumexp(ref_flat, axis=-1)
    ref_picked = jnp.take_along_axis(ref_flat, y.reshape(-1, 1), axis=-1)[:, 0]
    ref_loss = jnp.mean(ref_lse - ref_picked)

    assert logits.shape == (B, T, vocab_size)
    assert jnp.allclose(logits, ref_logits, atol=1e-5, rtol=1e-5)
    assert jnp.allclose(loss, ref_loss, atol=1e-5, rtol=1e-5)

    # y=None path (loss must be None, like the torch module); default tile size.
    logits_only, loss_none = bigram_forward(x, emb, None, emb_prepared=emb_p)
    jax.block_until_ready(logits_only)
    assert loss_none is None
    assert jnp.allclose(logits_only, ref_logits, atol=1e-5, rtol=1e-5)

    # Loss-only variant (no logits writeback), e.g. for a training step.
    _, loss2 = bigram_forward(x, emb, y, want_logits=False, emb_prepared=emb_p)
    loss2 = jax.block_until_ready(loss2)
    assert jnp.allclose(loss2, ref_loss, atol=1e-5, rtol=1e-5)

    print("KERNEL_OK")
</pallas_src>

<mosaic_0001>
module attributes {stable_mosaic.version = 11 : i64} {
  func.func @_logits_loss_kernel(%arg0: i32, %arg1: memref<16xi32, #tpu.memory_space<smem>>, %arg2: memref<8x1xi32, #tpu.memory_space<vmem>>, %arg3: memref<128x128xf32, #tpu.memory_space<vmem>>, %arg4: memref<8x65xf32, #tpu.memory_space<vmem>>, %arg5: memref<8x1xf32, #tpu.memory_space<vmem>>, %arg6: memref<8x128xf32, #tpu.memory_space<vmem>>) attributes {dimension_semantics = [#tpu.dimension_semantics<parallel>], iteration_bounds = array<i64: 2>, scalar_prefetch = 1 : i64, scratch_operands = 1 : i64, tpu.core_type = #tpu.core_type<tc>, window_params = [{transform_indices = @transform_0, window_bounds = array<i64: 8, 1>}, {pipeline_mode = #tpu.pipeline_mode<synchronous>, transform_indices = @transform_1, window_bounds = array<i64: 128, 128>}, {transform_indices = @transform_2, window_bounds = array<i64: 8, 65>}, {transform_indices = @transform_3, window_bounds = array<i64: 8, 1>}]} {
    %c8_i32 = arith.constant 8 : i32
    %0 = arith.muli %arg0, %c8_i32 : i32
    %c0_i32 = arith.constant 0 : i32
    %1 = arith.addi %0, %c0_i32 : i32
    %2 = arith.index_cast %1 : i32 to index
    %3 = memref.load %arg1[%2] : memref<16xi32, #tpu.memory_space<smem>>
    %4 = arith.index_cast %3 : i32 to index
    %c0 = arith.constant 0 : index
    %5 = vector.load %arg3[%4, %c0] : memref<128x128xf32, #tpu.memory_space<vmem>>, vector<1x128xf32>
    %c0_0 = arith.constant 0 : index
    %c0_1 = arith.constant 0 : index
    %6 = vector.load %arg6[%c0_0, %c0_1] : memref<8x128xf32, #tpu.memory_space<vmem>>, vector<1x128xf32>
    tpu.vector_store %arg6[%c0_0, %c0_1], %5 {strides = array<i32>} : memref<8x128xf32, #tpu.memory_space<vmem>>, vector<1x128xf32>,
    %c1_i32 = arith.constant 1 : i32
    %7 = arith.addi %0, %c1_i32 : i32
    %8 = arith.index_cast %7 : i32 to index
    %9 = memref.load %arg1[%8] : memref<16xi32, #tpu.memory_space<smem>>
    %10 = arith.index_cast %9 : i32 to index
    %c0_2 = arith.constant 0 : index
    %11 = vector.load %arg3[%10, %c0_2] : memref<128x128xf32, #tpu.memory_space<vmem>>, vector<1x128xf32>
    %c1 = arith.constant 1 : index
    %c0_3 = arith.constant 0 : index
    %12 = vector.load %arg6[%c1, %c0_3] : memref<8x128xf32, #tpu.memory_space<vmem>>, vector<1x128xf32>
    tpu.vector_store %arg6[%c1, %c0_3], %11 {strides = array<i32>} : memref<8x128xf32, #tpu.memory_space<vmem>>, vector<1x128xf32>,
    %c2_i32 = arith.constant 2 : i32
    %13 = arith.addi %0, %c2_i32 : i32
    %14 = arith.index_cast %13 : i32 to index
    %15 = memref.load %arg1[%14] : memref<16xi32, #tpu.memory_space<smem>>
    %16 = arith.index_cast %15 : i32 to index
    %c0_4 = arith.constant 0 : index
    %17 = vector.load %arg3[%16, %c0_4] : memref<128x128xf32, #tpu.memory_space<vmem>>, vector<1x128xf32>
    %c2 = arith.constant 2 : index
    %c0_5 = arith.constant 0 : index
    %18 = vector.load %arg6[%c2, %c0_5] : memref<8x128xf32, #tpu.memory_space<vmem>>, vector<1x128xf32>
    tpu.vector_store %arg6[%c2, %c0_5], %17 {strides = array<i32>} : memref<8x128xf32, #tpu.memory_space<vmem>>, vector<1x128xf32>,
    %c3_i32 = arith.constant 3 : i32
    %19 = arith.addi %0, %c3_i32 : i32
    %20 = arith.index_cast %19 : i32 to index
    %21 = memref.load %arg1[%20] : memref<16xi32, #tpu.memory_space<smem>>
    %22 = arith.index_cast %21 : i32 to index
    %c0_6 = arith.constant 0 : index
    %23 = vector.load %arg3[%22, %c0_6] : memref<128x128xf32, #tpu.memory_space<vmem>>, vector<1x128xf32>
    %c3 = arith.constant 3 : index
    %c0_7 = arith.constant 0 : index
    %24 = vector.load %arg6[%c3, %c0_7] : memref<8x128xf32, #tpu.memory_space<vmem>>, vector<1x128xf32>
    tpu.vector_store %arg6[%c3, %c0_7], %23 {strides = array<i32>} : memref<8x128xf32, #tpu.memory_space<vmem>>, vector<1x128xf32>,
    %c4_i32 = arith.constant 4 : i32
    %25 = arith.addi %0, %c4_i32 : i32
    %26 = arith.index_cast %25 : i32 to index
    %27 = memref.load %arg1[%26] : memref<16xi32, #tpu.memory_space<smem>>
    %28 = arith.index_cast %27 : i32 to index
    %c0_8 = arith.constant 0 : index
    %29 = vector.load %arg3[%28, %c0_8] : memref<128x128xf32, #tpu.memory_space<vmem>>, vector<1x128xf32>
    %c4 = arith.constant 4 : index
    %c0_9 = arith.constant 0 : index
    %30 = vector.load %arg6[%c4, %c0_9] : memref<8x128xf32, #tpu.memory_space<vmem>>, vector<1x128xf32>
    tpu.vector_store %arg6[%c4, %c0_9], %29 {strides = array<i32>} : memref<8x128xf32, #tpu.memory_space<vmem>>, vector<1x128xf32>,
    %c5_i32 = arith.constant 5 : i32
    %31 = arith.addi %0, %c5_i32 : i32
    %32 = arith.index_cast %31 : i32 to index
    %33 = memref.load %arg1[%32] : memref<16xi32, #tpu.memory_space<smem>>
    %34 = arith.index_cast %33 : i32 to index
    %c0_10 = arith.constant 0 : index
    %35 = vector.load %arg3[%34, %c0_10] : memref<128x128xf32, #tpu.memory_space<vmem>>, vector<1x128xf32>
    %c5 = arith.constant 5 : index
    %c0_11 = arith.constant 0 : index
    %36 = vector.load %arg6[%c5, %c0_11] : memref<8x128xf32, #tpu.memory_space<vmem>>, vector<1x128xf32>
    tpu.vector_store %arg6[%c5, %c0_11], %35 {strides = array<i32>} : memref<8x128xf32, #tpu.memory_space<vmem>>, vector<1x128xf32>,
    %c6_i32 = arith.constant 6 : i32
    %37 = arith.addi %0, %c6_i32 : i32
    %38 = arith.index_cast %37 : i32 to index
    %39 = memref.load %arg1[%38] : memref<16xi32, #tpu.memory_space<smem>>
    %40 = arith.index_cast %39 : i32 to index
    %c0_12 = arith.constant 0 : index
    %41 = vector.load %arg3[%40, %c0_12] : memref<128x128xf32, #tpu.memory_space<vmem>>, vector<1x128xf32>
    %c6 = arith.constant 6 : index
    %c0_13 = arith.constant 0 : index
    %42 = vector.load %arg6[%c6, %c0_13] : memref<8x128xf32, #tpu.memory_space<vmem>>, vector<1x128xf32>
    tpu.vector_store %arg6[%c6, %c0_13], %41 {strides = array<i32>} : memref<8x128xf32, #tpu.memory_space<vmem>>, vector<1x128xf32>,
    %c7_i32 = arith.constant 7 : i32
    %43 = arith.addi %0, %c7_i32 : i32
    %44 = arith.index_cast %43 : i32 to index
    %45 = memref.load %arg1[%44] : memref<16xi32, #tpu.memory_space<smem>>
    %46 = arith.index_cast %45 : i32 to index
    %c0_14 = arith.constant 0 : index
    %47 = vector.load %arg3[%46, %c0_14] : memref<128x128xf32, #tpu.memory_space<vmem>>, vector<1x128xf32>
    %c7 = arith.constant 7 : index
    %c0_15 = arith.constant 0 : index
    %48 = vector.load %arg6[%c7, %c0_15] : memref<8x128xf32, #tpu.memory_space<vmem>>, vector<1x128xf32>
    tpu.vector_store %arg6[%c7, %c0_15], %47 {strides = array<i32>} : memref<8x128xf32, #tpu.memory_space<vmem>>, vector<1x128xf32>,
    %c0_16 = arith.constant 0 : index
    %c0_17 = arith.constant 0 : index
    %49 = vector.load %arg6[%c0_16, %c0_17] : memref<8x128xf32, #tpu.memory_space<vmem>>, vector<8x128xf32>
    %50 = vector.extract_strided_slice %49 {offsets = [0, 0], sizes = [8, 65], strides = [1, 1]} : vector<8x128xf32> to vector<8x65xf32>
    %c0_18 = arith.constant 0 : index
    %c0_19 = arith.constant 0 : index
    %51 = vector.load %arg4[%c0_18, %c0_19] : memref<8x65xf32, #tpu.memory_space<vmem>>, vector<8x65xf32>
    tpu.vector_store %arg4[%c0_18, %c0_19], %50 {strides = array<i32>} : memref<8x65xf32, #tpu.memory_space<vmem>>, vector<8x65xf32>,
    %c0_20 = arith.constant 0 : index
    %c0_21 = arith.constant 0 : index
    %52 = vector.load %arg2[%c0_20, %c0_21] : memref<8x1xi32, #tpu.memory_space<vmem>>, vector<8x1xi32>
    %cst = arith.constant dense<0xFF800000> : vector<8xf32>
    %53 = vector.multi_reduction <maximumf>, %49, %cst [1] : vector<8x128xf32> to vector<8xf32>
    %54 = vector.shape_cast %53 : vector<8xf32> to vector<8x1xf32>
    %55 = vector.broadcast %54 : vector<8x1xf32> to vector<8x128xf32>
    %56 = arith.subf %49, %55 : vector<8x128xf32>
    %57 = math.exp %56 : vector<8x128xf32>
    %cst_22 = arith.constant dense<0.000000e+00> : vector<8xf32>
    %58 = vector.multi_reduction <add>, %57, %cst_22 [1] : vector<8x128xf32> to vector<8xf32>
    %59 = vector.shape_cast %58 : vector<8xf32> to vector<8x1xf32>
    %60 = math.log %59 : vector<8x1xf32>
    %61 = arith.addf %54, %60 : vector<8x1xf32>
    %62 = tpu.iota {dimensions = array<i32: 1>} : vector<8x128xi32>
    %63 = vector.broadcast %52 : vector<8x1xi32> to vector<8x128xi32>
    %64 = arith.cmpi eq, %62, %63 : vector<8x128xi32>
    %cst_23 = arith.constant 0.000000e+00 : f32
    %65 = vector.broadcast %cst_23 : f32 to vector<8x128xf32>
    %66 = arith.select %64, %49, %65 : vector<8x128xi1>, vector<8x128xf32>
    %cst_24 = arith.constant dense<0.000000e+00> : vector<8xf32>
    %67 = vector.multi_reduction <add>, %66, %cst_24 [1] : vector<8x128xf32> to vector<8xf32>
    %68 = vector.shape_cast %67 : vector<8xf32> to vector<8x1xf32>
    %69 = arith.subf %61, %68 : vector<8x1xf32>
    %c0_25 = arith.constant 0 : index
    %c0_26 = arith.constant 0 : index
    %70 = vector.load %arg5[%c0_25, %c0_26] : memref<8x1xf32, #tpu.memory_space<vmem>>, vector<8x1xf32>
    tpu.vector_store %arg5[%c0_25, %c0_26], %69 {strides = array<i32>} : memref<8x1xf32, #tpu.memory_space<vmem>>, vector<8x1xf32>,
    return
  }
  func.func @transform_0(%arg0: i32, %arg1: memref<16xi32, #tpu.memory_space<smem>>) -> (i32, i32) {
    %c0_i32 = arith.constant 0 : i32
    %c0_i32_0 = arith.constant 0 : i32
    return %arg0, %c0_i32 : i32, i32
  }
  func.func @transform_1(%arg0: i32, %arg1: memref<16xi32, #tpu.memory_space<smem>>) -> (i32, i32) {
    %c0_i32 = arith.constant 0 : i32
    %c0_i32_0 = arith.constant 0 : i32
    %c0_i32_1 = arith.constant 0 : i32
    return %c0_i32, %c0_i32_0 : i32, i32
  }
  func.func @transform_2(%arg0: i32, %arg1: memref<16xi32, #tpu.memory_space<smem>>) -> (i32, i32) {
    %c0_i32 = arith.constant 0 : i32
    %c0_i32_0 = arith.constant 0 : i32
    return %arg0, %c0_i32 : i32, i32
  }
  func.func @transform_3(%arg0: i32, %arg1: memref<16xi32, #tpu.memory_space<smem>>) -> (i32, i32) {
    %c0_i32 = arith.constant 0 : i32
    %c0_i32_0 = arith.constant 0 : i32
    return %arg0, %c0_i32 : i32, i32
  }
}

</mosaic_0001>

<bundles_post_ra>
// kernel: tpu_custom_call.1
= control target key start
LH: loop header
LB: loop body
LE: loop exit
PB: predicated region body
PF: predicated region fallthrough
CT: control target
= control target key end

     0   :  { %s580_s18 = smov [#allocation4]   ;;  %s729_s0 = inlined_call_operand.vmem [shape: s32[16], index: 0, kind: input, shape index: {}]   ;;  %s730_s1 = inlined_call_operand.vmem [shape: s32[16,1], index: 1, kind: input, shape index: {}]   ;;  %s731_s2 = inlined_call_operand.hbm [shape: f32[128,128], index: 2, kind: input, shape index: {}]   ;;  %s732_s3 = inlined_call_operand.hbm [shape: f32[16,65], index: 3, kind: output, shape index: {0}]   ;;  %s733_s4 = inlined_call_operand.vmem [shape: f32[16,1], index: 4, kind: output, shape index: {1}]  }
   0x1   :  { %734 = sst [smem:[#allocation12_spill]] %s731_s2  ;;  %s11_s17 = sshll.u32 %s729_s0, 4  ;;  %s12_s17 = int_to_ptr.vmem [resolvable:$true] %s11_s17 }
   0x2   :  { %14 = dma.vmem_to_smem %s12_s17, 16, %s580_s18, [#allocation3] }
   0x3   :  { %554 = dma.done.wait [#allocation3], 16 }
   0x4   :  { %555 = vsyncadd [#allocation3], 4294967280 }
   0x5   :  { %17 = sfence }
   0x6   :  { %18 = vsyncpa [#allocation6], 0 }
   0x7   :  { %19 = vsyncpa [#allocation7], 0 }
   0x8   :  { %21 = vsyncpa [#allocation7 + $0x1], 0  ;;  %s613_s19 = smov 0   ;;  %s615_s20 = smov 0  }
   0x9   :  { %s617_s21 = smov 0   ;;  %s619_s22 = smov 0  }
   0xa LB: > { %s634_s0 = sadd.s32 4294967295, %s578_s22   ;;  %s395_s23 = sadd.s32 4294967294, %s578_s22   ;;  %s578_s22 = sphi %s619_s22, %s741_s22   ;;  %s574_s21 = sphi %s617_s21, %s740_s21   ;;  %s570_s20 = sphi %s615_s20, %s739_s20   ;;  %s566_s19 = sphi %s613_s19, %s738_s19  }
   0xb   : > { %s638_s24 = sadd.s32 1, %s578_s22   ;;  %s81_s25 = sadd.s32 1, %s574_s21 }
   0xc   : > { %s78_s26 = ssub.s32 %s578_s22, %s638_s24  ;;  %p91_p0 = scmp.ne.s32.totalorder %s574_s21, %s570_s20 }
   0xd   : > { %p79_p1 = scmp.eq.s32.totalorder %s78_s26, 0  ;;  %p92_p2 = scmp.eq.s32.totalorder %s634_s0, 1 }
   0xe   : > { %p97_p3 = scmp.ne.s32.totalorder %s570_s20, %s566_s19  ;;  %p98_p4 = scmp.eq.s32.totalorder %s395_s23, 1 }
   0xf   : > { %s649_s27 = scalar_select %p79_p1, %s574_s21, %s81_s25  }
  0x10   : > { %p651_p5 = por %p92_p2, %p91_p0  ;;  %p655_p6 = por %p98_p4, %p97_p3 }
  0x11   : > { %p396_p7 = scmp.ge.s32.totalorder %s578_s22, 1  ;;  %p131_p8 = scmp.lt.s32.totalorder %s578_s22, 3 }
  0x12   : > { %p423_p9 = scmp.eq.s32.totalorder %s634_s0, 0  ;;  %s737_s2 = sld [smem:[#allocation12_spill]] }
  0x13   : > { %p132_p10 = pnand %p396_p7, %p131_p8  ;;  %s581_s7 = smov [#allocation5]  }
  0x14   : > { %s144_s8 = sshll.u32 %s581_s7, 4  ;;  %s582_s9 = smov 128   ;;  %s145_s8 = int_to_ptr.vmem [resolvable:$true] %s144_s8 }
  0x15   : > { %p415_p11 = pneg %p132_p10  ;;  %s583_s10 = smov 8  }
  0x16   : > { %167 = sbr.rel (%p132_p10) target bundleno = 310 (0x136), region = 28 }
  0x17   : > { %p416_p12 = pnand %p423_p9, %p415_p11 }
  0x18   : > { %s142_s6 = sshll.u32 %s737_s2, 4  ;;  %s143_s6 = int_to_ptr.hbm [resolvable:$true] %s142_s6 }
  0x19   : > { %418 = dma.hbm_to_vmem [thread:$0]  (!%p416_p12), %s143_s6, 2048, %s145_s8, [#allocation6], %s582_s9, %s582_s9, %s583_s10  }
  0x1b   : > { %557 = dma.done.wait (%p423_p9), [#allocation6], 2048  }
  0x1c   : > { %559 = vsyncadd (%p423_p9), [#allocation6], 4294965248  ;;  %s672_s11 = sshll.u32 %s634_s0, 3  ;;  %v584_v0 = vmov 0   ;;  %p195_p13 = scmp.lt.s32.totalorder %s634_s0, 1  ;;  %v257_v15 = vlaneseq  ;;  %vm244_vm1 = vcmask 531456  }
  0x1d   : > { %s204_s12 = sld [smem:[#allocation4 + %s672_s11]]  ;;  %s208_s13 = sadd.s32 1, %s672_s11  ;;  %463 = vset.pattern.permute.xlu0 %v584_v0 }
  0x1e   : > { %s209_s14 = sld [smem:[#allocation4 + %s208_s13]]  ;;  %s213_s15 = sadd.s32 2, %s672_s11  ;;  %v258_v16 = vand.u32 127, %v257_v15 }
  0x1f   : > { %s214_s16 = sld [smem:[#allocation4 + %s213_s15]]  ;;  %s218_s17 = sadd.s32 3, %s672_s11 }
  0x20   : > { %s219_s18 = sld [smem:[#allocation4 + %s218_s17]]  ;;  %s223_s23 = sadd.s32 4, %s672_s11 }
  0x21   : > { %s224_s25 = sld [smem:[#allocation4 + %s223_s23]]  ;;  %s228_s26 = sadd.s32 5, %s672_s11 }
  0x22   : > { %s229_s30 = sld [smem:[#allocation4 + %s228_s26]]  ;;  %s233_s5 = sadd.s32 6, %s672_s11 }
  0x23   : > { %s234_s6 = sld [smem:[#allocation4 + %s233_s5]]  ;;  %s205_s7 = scalar_lea.vmem [#allocation5], %s204_s12 }
  0x24   : > { %v206_v1 = vld [vmem:[%s205_s7] sm:$0x1]  ;;  %s238_s8 = sadd.s32 7, %s672_s11  ;;  %s210_s9 = scalar_lea.vmem [#allocation5], %s209_s14 }
  0x25   : > { %207 = vst [vmem:[#allocation2] sm:$0x1] %v206_v1  ;;  %v211_v2 = vld [vmem:[%s210_s9] sm:$0x1]  ;;  %s239_s10 = sld [smem:[#allocation4 + %s238_s8]]  ;;  %s215_s2 = scalar_lea.vmem [#allocation5], %s214_s16 }
  0x26   : > { %212 = vst [vmem:[#allocation2 + $0x1] sm:$0x1] %v211_v2  ;;  %v216_v3 = vld [vmem:[%s215_s2] sm:$0x1]  ;;  %s220_s13 = scalar_lea.vmem [#allocation5], %s219_s18  ;;  %s743_s0 = smov (!%p195_p13, %s634_s0), 1 }
  0x27   : > { %217 = vst [vmem:[#allocation2 + $0x2] sm:$0x1] %v216_v3  ;;  %v221_v4 = vld [vmem:[%s220_s13] sm:$0x1]  ;;  %s225_s15 = scalar_lea.vmem [#allocation5], %s224_s25  ;;  %s402_s2 = sshll.u32 %s743_s0, 3 }
  0x28   : > { %222 = vst [vmem:[#allocation2 + $0x3] sm:$0x1] %v221_v4  ;;  %v226_v5 = vld [vmem:[%s225_s15] sm:$0x1]  ;;  %s230_s17 = scalar_lea.vmem [#allocation5], %s229_s30  ;;  %s198_s23 = scalar_lea.vmem %s730_s1, %s402_s2 }
  0x29   : > { %227 = vst [vmem:[#allocation2 + $0x4] sm:$0x1] %v226_v5  ;;  %v231_v6 = vld [vmem:[%s230_s17] sm:$0x1]  ;;  %s235_s12 = scalar_lea.vmem [#allocation5], %s234_s6  ;;  %s186_s25 = sand.u32 1, %s570_s20  }
  0x2a   : > { %232 = vst [vmem:[#allocation2 + $0x5] sm:$0x1] %v231_v6  ;;  %v236_v7 = vld [vmem:[%s235_s12] sm:$0x1]  ;;  %s401_s26 = sshll.u32 %s186_s25, 3  ;;  %s284_s6 = scalar_lea.hbm %s732_s3, %s672_s11 }
  0x2b   : > { %237 = vst [vmem:[#allocation2 + $0x6] sm:$0x1] %v236_v7  ;;  %s240_s14 = scalar_lea.vmem [#allocation5], %s239_s10  ;;  %v246_v10 = vld [vmem:[%s198_s23] sm:$0xff]  ;;  %s188_s7 = scalar_lea.vmem [#allocation8], %s401_s26 }
  0x2c   : > { %v241_v8 = vld [vmem:[%s240_s14] sm:$0x1]  ;;  %s286_s8 = sshll.u32 %s188_s7, 4  ;;  %s288_s9 = sshll.u32 %s284_s6, 4  ;;  %s287_s8 = int_to_ptr.vmem [resolvable:$true] %s286_s8  ;;  %s289_s9 = int_to_ptr.hbm [resolvable:$true] %s288_s9 }
  0x2d   : > { %242 = vst [vmem:[#allocation2 + $0x7] sm:$0x1] %v241_v8  ;;  %s270_s10 = scalar_lea.sflag [#allocation7], %s186_s25  ;;  %s524_s13 = sshra.s32 %s289_s9, 4  ;;  %s525_s13 = int_to_ptr.hbm [resolvable:$true] %s524_s13 }
  0x2e   : > { %s526_s15 = scalar_lea.hbm %s525_s13, 8  ;;  %s530_s14 = scalar_lea.hbm %s732_s3, 16 }
  0x2f   : > { %p527_p0 = scmp.ne.s32.totalorder %s525_s13, %s526_s15  ;;  %p531_p3 = scmp.lt.s32.totalorder %s525_s13, %s732_s3 }
  0x30   : > { %p532_p4 = scmp.lt.s32.totalorder %s530_s14, %s526_s15 }
  0x31   : > { %p528_p1 = pnand %p527_p0, %p651_p5 }
  0x32   : > { %p533_p7 = por %p532_p4, %p531_p3 }
  0x33   : > { %p529_p2 = pneg %p528_p1 }
  0x34   : > { %v243_v9 = vld [vmem:[#allocation2] sm:$0xff] }
  0x35   : > { %247 = vmax.xlane.f32.xlu0 %v243_v9  ;;  %245 = vst.msk [vmem:[%s188_s7] sm:$0xff] %vm244_vm1, %v243_v9  ;;  %p534_p8 = pnand %p533_p7, %p529_p2 }
  0x49   : > { %260 = vperm.xlu0 %463, %v246_v10  }
  0xa8   : > { %v248_v11 = vpop.xlane.xlu0 %247 }
  0xa9   : > { %v249_v12 = vsub.f32 %v243_v9, %v248_v11 }
  0xab   : > { %v250_v13 = vmul.f32 1.442695, %v249_v12 }
  0xad   : > { %464 = vpow2.f32 %v250_v13 }
  0xb3   : > { %v465_v14 = vpop.eup %464 }
  0xb4   : > { %252 = vadd.xlane.f32.xlu1 %v465_v14 }
  0xbb   : > { %v261_v17 = vpop.permute.xlu0 %260 }
  0xbc   : > { %vm262_vm0 = vcmp.eq.s32.totalorder %v258_v16, %v261_v17 }
  0xbd   : > { %v263_v18 = vsel %vm262_vm0, %v243_v9, 0.0 }
  0xbe   : > { %264 = vadd.xlane.f32.xlu1 %v263_v18 }
  0xbf   : > { %537 = shalt.err (!%p534_p8)
}
  0xc0   : > { %413 = dma.vmem_to_hbm [thread:$0]  (%p651_p5), %s287_s8, 128, %s289_s9, %s270_s10   ;;  %vm267_vm2 = vcmask 7168  }
  0xc1   : > { %s202_s25 = scalar_lea.vmem %s733_s4, %s402_s2 }
 0x127   : > { %v253_v19 = vpop.xlane.xlu1 %252 }
 0x128   : > { %466 = vlog2.f32 %v253_v19 }
 0x12e   : > { %v467_v20 = vpop.eup %466 }
 0x12f   : > { %v255_v21 = vmul.f32 0.6931472, %v467_v20 }
 0x131   : > { %v256_v22 = vadd.f32 %v255_v21, %v248_v11  ;;  %v265_v23 = vpop.xlane.xlu1 %264 }
 0x133   : > { %v266_v24 = vsub.f32 %v256_v22, %v265_v23 }
 0x135   : > { %268 = vst.msk [vmem:[%s202_s25] sm:$0xff] %vm267_vm2, %v266_v24 }
 0x136 PF: > { %p425_p9 = scmp.ge.s32.totalorder %s578_s22, 2  ;;  %s303_s28 = sand.u32 1, %s566_s19  }
 0x137   : > { %s304_s26 = scalar_lea.sflag [#allocation7], %s303_s28 }
 0x138   : > { %p420_p5 = pnand %p425_p9, %p655_p6 }
 0x13a   : > { %p421_p10 = pneg %p420_p5 }
 0x13c   : > { %561 = dma.done.wait (%p421_p10), %s304_s26, 128  }
 0x13d   : > { %563 = vsyncadd (%p421_p10), %s304_s26, 4294967168  ;;  %p24_p11 = scmp.ge.s32.totalorder %s638_s24, 4   ;;  %s738_s19 = smov %s570_s20 }
 0x13e   : > { %s739_s20 = smov %s574_s21  ;;  %s740_s21 = smov %s649_s27 }
 0x13f   : > { %s741_s22 = smov %s638_s24  ;;  %26 = sbr.rel (!%p24_p11) target bundleno = 10 (0xa), region = 88 }
 0x144   :  { %317 = vsyncpa [#allocation6], 1 }
 0x145   :  { %319 = vsyncpa [#allocation6 + $0x1], 1 }
 0x146   :  { %320 = vsyncpa [#allocation7], 1 }
 0x147   :  { %322 = vsyncpa [#allocation7 + $0x1], 1 }

</bundles_post_ra>
